<compile_context>
chip_gen: v7x
topology: tpu7x:2x2x1
jax: 0.10.0
libtpu: 0.0.40
codegen_flags: <defaults>
</compile_context>

<pallas_src>
import jax
import jax.numpy as jnp
from jax.experimental import pallas as pl
from jax.experimental.pallas import tpu as pltpu

INPUT_DIM = 2                      # the module hard-codes input_dim = 2
MXU_WEIGHT_DTYPE = jnp.float32     # jnp.bfloat16 halves weight VMEM/HBM (looser tol)
MXU_HEAD_MIN_H = 512               # 1-unit head on the MXU when H >= this


def _vmem_limit_bytes():
    """3/4 of physical per-core VMEM, capped at 96 MiB; None -> compiler default."""
    try:
        cap = int(pltpu.get_tpu_info().vmem_capacity_bytes)
        return int(min(cap * 3 // 4, 96 << 20))
    except Exception:
        return None


_VMEM_LIMIT = _vmem_limit_bytes()

_COMPILER_PARAMS = pltpu.CompilerParams(
    dimension_semantics=("parallel",),
    vmem_limit_bytes=_VMEM_LIMIT,
)


def _dot(a, b):
    """MXU matmul; casts the activation to the (possibly bf16) weight dtype."""
    return jnp.dot(a.astype(b.dtype), b, preferred_element_type=jnp.float32)


def _round_up(x, m):
    return ((x + m - 1) // m) * m


def _batch_tile(batch, row_bytes, fixed_bytes=0, max_tile=512):
    """VMEM-aware batch tile.

    Multiple of 8, <= max_tile; the double-buffered per-row operands plus the
    resident weights must fit the scoped VMEM budget.  For batch > 256 force
    >= 2 grid steps so v7x's second TensorCore has work to steal."""
    budget = (_VMEM_LIMIT or (32 << 20)) - fixed_bytes - (4 << 20)   # headroom
    budget = max(budget, 1 << 20)
    tb = min(max_tile, _round_up(batch, 8))
    while tb > 8 and 2 * tb * row_bytes > budget:
        tb = max(8, _round_up(tb // 2, 8))
    if batch > 256:
        tb = min(tb, _round_up(pl.cdiv(batch, 2), 8))
    return tb


def _resident_spec(arr, single_buffer):
    """Full-array block with a constant index_map -> loaded once, VMEM-resident.
    single_buffer=True drops the useless second pipeline buffer."""
    zeros = (0,) * arr.ndim
    index_map = lambda i: zeros
    if single_buffer:
        try:
            return pl.BlockSpec(arr.shape, index_map, pipeline_mode=pl.Buffered(1))
        except TypeError:          # older JAX without pipeline_mode on BlockSpec
            pass
    return pl.BlockSpec(arr.shape, index_map)


def _batched_spec(tb, trailing):
    """Block over the leading batch axis; trailing dims are full-extent."""
    zeros = (0,) * len(trailing)
    return pl.BlockSpec((tb,) + tuple(trailing), lambda i: (i,) + zeros)


def _param_bytes(params, single_buffer):
    mult = 1 if single_buffer else 2
    return mult * sum(int(p.size) * p.dtype.itemsize for p in params)


def _head(h, w_head_ref, use_mxu):
    """1-unit output head: MXU matmul for wide H, VPU multiply + lane reduce else."""
    if use_mxu:
        return _dot(h, w_head_ref[...])                                # [tb,H]@[H,1]
    return jnp.sum(h * w_head_ref[...], axis=-1, keepdims=True)       # VPU + XLU


def _with_fallback(fn, *args):
    """Try the single-buffered (Buffered(1)) fast path; if the running Mosaic
    rejects it, retry with default double-buffered weight specs."""
    try:
        return fn(*args, single_buffer=True)
    except Exception:
        return fn(*args, single_buffer=False)


# ----------------------------------------------------------------------------
# 'standard':  x -> [Linear -> tanh]*N -> Linear(., 1)
# ----------------------------------------------------------------------------
def _standard_impl(x, weights, biases, single_buffer=True):
    """weights[i]: [in_i, out_i], biases[i]: [1, out_i]; last pair is the 1-unit head.
    All hidden widths must be equal (packed-parameter fast path)."""
    n_hidden = len(weights) - 1
    H = weights[0].shape[1]
    assert all(w.shape[1] == H for w in weights[:n_hidden]), "equal hidden sizes required"
    batch = x.shape[0]
    n_mid = n_hidden - 1
    head_mxu = H >= MXU_HEAD_MIN_H

    w_in, b_in = weights[0], biases[0]                          # [2,H], [1,H]
    w_head = weights[-1] if head_mxu else weights[-1].reshape(1, H)
    b_out = biases[-1].reshape(1, 1)

    params = [w_in, b_in]
    if n_mid > 0:
        params += [jnp.stack(weights[1:n_hidden]).astype(MXU_WEIGHT_DTYPE),  # [n_mid,H,H]
                   jnp.stack(biases[1:n_hidden])]                            # [n_mid,1,H]
    params += [w_head, b_out]

    row_bytes = 4 * (INPUT_DIM + 1 + 4 * H)       # x + out blocks + live h values
    tb = _batch_tile(batch, row_bytes, _param_bytes(params, single_buffer))

    def kernel(x_ref, w_in_ref, b_in_ref, *rest):
        if n_mid > 0:
            w_mid_ref, b_mid_ref, w_head_ref, b_out_ref, out_ref = rest
        else:
            w_head_ref, b_out_ref, out_ref = rest
        xv = x_ref[...]
        # First layer (K = 2): VPU broadcast-FMAs, emitted exactly once.
        h = jnp.tanh(xv[:, 0:1] * w_in_ref[0:1, :] + xv[:, 1:2] * w_in_ref[1:2, :]
                     + b_in_ref[...])
        # TODO(synk): for very deep stacks (n_mid >~ 8) switch to lax.fori_loop
        # over w_mid_ref[i] to bound vreg live ranges.
        for i in range(n_mid):
            h = jnp.tanh(_dot(h, w_mid_ref[i]) + b_mid_ref[i])
        out_ref[...] = _head(h, w_head_ref, head_mxu) + b_out_ref[...]

    in_specs = ([_batched_spec(tb, (INPUT_DIM,))]
                + [_resident_spec(p, single_buffer) for p in params])
    return pl.pallas_call(
        kernel,
        out_shape=jax.ShapeDtypeStruct((batch, 1), jnp.float32),
        grid=(pl.cdiv(batch, tb),),
        in_specs=in_specs,
        out_specs=_batched_spec(tb, (1,)),
        compiler_params=_COMPILER_PARAMS,
    )(x, *params)


def standard_forward(x, weights, biases):
    return _with_fallback(_standard_impl, x, weights, biases)


# ----------------------------------------------------------------------------
# 'cascade':  each layer sees cat([x, prev_output]); implemented as split matmuls.
# ----------------------------------------------------------------------------
def _cascade_impl(x, wx_list, wh_list, b_list, single_buffer=True):
    """Layer i: tanh(x @ wx[i] + h @ wh[i] + b[i]); last triple is the linear head.
    Hidden widths must be equal (packed-parameter fast path)."""
    n_hidden = len(wx_list) - 1
    H = wx_list[0].shape[1]
    assert all(w.shape[1] == H for w in wx_list[:n_hidden]), "equal hidden sizes required"
    batch = x.shape[0]
    n_mid = n_hidden - 1
    head_mxu = H >= MXU_HEAD_MIN_H

    # All x-contributions + biases packed into ONE K=2 weight / bias pair.
    # Layer 0 sees cat([x, x]):  x@wx0 + x@wh0 == x@(wx0 + wh0)   (exact fold).
    xw_cols = [wx_list[0] + wh_list[0]] + list(wx_list[1:n_hidden]) + [wx_list[-1]]
    xw_flat = jnp.concatenate(xw_cols, axis=1)        # [2, n_hidden*H + 1]
    xb_flat = jnp.concatenate(b_list, axis=1)         # [1, n_hidden*H + 1]
    w_head = wh_list[-1] if head_mxu else wh_list[-1].reshape(1, H)

    params = [xw_flat, xb_flat]
    if n_mid > 0:
        params += [jnp.stack(wh_list[1:n_hidden]).astype(MXU_WEIGHT_DTYPE)]  # [n_mid,H,H]
    params += [w_head]

    row_bytes = 4 * (INPUT_DIM + 1 + 4 * H + n_hidden * H)   # + live xc value
    tb = _batch_tile(batch, row_bytes, _param_bytes(params, single_buffer))

    def kernel(x_ref, xw_ref, xb_ref, *rest):
        if n_mid > 0:
            wh_mid_ref, w_head_ref, out_ref = rest
        else:
            w_head_ref, out_ref = rest
        # Hoisted x path: one K=2 MXU matmul gives every layer's x-term + bias.
        xc = _dot(x_ref[...], xw_ref[...]) + xb_ref[...]      # [tb, n_hidden*H + 1]
        h = jnp.tanh(xc[:, 0:H])
        # TODO(synk): for n_mid >~ 8 switch to lax.fori_loop to bound live ranges.
        for i in range(n_mid):
            h = jnp.tanh(_dot(h, wh_mid_ref[i]) + xc[:, (i + 1) * H:(i + 2) * H])
        out_ref[...] = xc[:, n_hidden * H:] + _head(h, w_head_ref, head_mxu)

    in_specs = ([_batched_spec(tb, (INPUT_DIM,))]
                + [_resident_spec(p, single_buffer) for p in params])
    return pl.pallas_call(
        kernel,
        out_shape=jax.ShapeDtypeStruct((batch, 1), jnp.float32),
        grid=(pl.cdiv(batch, tb),),
        in_specs=in_specs,
        out_specs=_batched_spec(tb, (1,)),
        compiler_params=_COMPILER_PARAMS,
    )(x, *params)


def cascade_forward(x, wx_list, wh_list, b_list):
    return _with_fallback(_cascade_impl, x, wx_list, wh_list, b_list)


# ----------------------------------------------------------------------------
# 'elman':  combined = cat(x, h0); per layer h_i = tanh(Linear(combined)),
#           combined = cat(x, h_i); output = Linear(h_last).
# ----------------------------------------------------------------------------
def _elman_impl(x, h0, wx_list, wh_list, b_list, w_out, b_out, single_buffer=True):
    # TODO(synk): if this net is run over a time sequence, hoist the time loop
    # inside the kernel (weights stay VMEM-resident); the module's forward is
    # a single step.
    L = len(wx_list)
    H = wx_list[0].shape[1]
    assert all(w.shape[1] == H for w in wx_list), "equal hidden sizes required"
    batch = x.shape[0]
    head_mxu = H >= MXU_HEAD_MIN_H

    xw_flat = jnp.concatenate(wx_list, axis=1)               # [2, L*H]
    xb_flat = jnp.concatenate(b_list, axis=1)                # [1, L*H]
    wh_all = jnp.stack(wh_list).astype(MXU_WEIGHT_DTYPE)     # [L, H, H]
    w_head = w_out if head_mxu else w_out.reshape(1, H)
    bo = b_out.reshape(1, 1)
    params = [xw_flat, xb_flat, wh_all, w_head, bo]

    # Per-row blocks: x, h0, out, lane-dense hidden slab + live xc / prev values.
    row_bytes = 4 * (INPUT_DIM + H + 1 + 2 * L * H + 2 * H)
    tb = _batch_tile(batch, row_bytes, _param_bytes(params, single_buffer))

    def kernel(x_ref, h0_ref, xw_ref, xb_ref, wh_ref, w_head_ref, bo_ref,
               out_ref, hid_ref):
        # Hoisted x path: one K=2 MXU matmul gives every layer's x-term + bias.
        xc = _dot(x_ref[...], xw_ref[...]) + xb_ref[...]      # [tb, L*H]
        prev = h0_ref[...]
        # TODO(synk): for L >~ 8 switch to lax.fori_loop to bound live ranges.
        for i in range(L):
            prev = jnp.tanh(_dot(prev, wh_ref[i]) + xc[:, i * H:(i + 1) * H])
            hid_ref[:, i * H:(i + 1) * H] = prev              # lane-dense slab
        out_ref[...] = _head(prev, w_head_ref, head_mxu) + bo_ref[...]

    in_specs = ([_batched_spec(tb, (INPUT_DIM,)), _batched_spec(tb, (H,))]
                + [_resident_spec(p, single_buffer) for p in params])
    out_shapes = (jax.ShapeDtypeStruct((batch, 1), jnp.float32),
                  jax.ShapeDtypeStruct((batch, L * H), jnp.float32))
    out_specs = (_batched_spec(tb, (1,)), _batched_spec(tb, (L * H,)))
    output, hid_slab = pl.pallas_call(
        kernel,
        out_shape=out_shapes,
        grid=(pl.cdiv(batch, tb),),
        in_specs=in_specs,
        out_specs=out_specs,
        compiler_params=_COMPILER_PARAMS,
    )(x, h0, *params)
    hidden_next = [hid_slab[:, i * H:(i + 1) * H] for i in range(L)]
    return output, hidden_next


def elman_forward(x, h0, wx_list, wh_list, b_list, w_out, b_out):
    return _with_fallback(_elman_impl, x, h0, wx_list, wh_list, b_list, w_out, b_out)


# ----------------------------------------------------------------------------
# Deterministic parameter init (PyTorch nn.Linear default: U(-1/sqrt(fan_in), .))
# ----------------------------------------------------------------------------
def init_linear(key, fan_in, fan_out):
    kw, kb = jax.random.split(key)
    bound = 1.0 / float(fan_in) ** 0.5
    w = jax.random.uniform(kw, (fan_in, fan_out), jnp.float32, -bound, bound)
    b = jax.random.uniform(kb, (1, fan_out), jnp.float32, -bound, bound)
    return w, b


# ----------------------------------------------------------------------------
# Pure-JAX references (correctness check only)
# ----------------------------------------------------------------------------
def standard_ref(x, weights, biases):
    h = x
    for w, b in zip(weights[:-1], biases[:-1]):
        h = jnp.tanh(h @ w + b)
    return h @ weights[-1] + biases[-1]


def cascade_ref(x, wx_list, wh_list, b_list):
    h = x
    for wx, wh, b in zip(wx_list[:-1], wh_list[:-1], b_list[:-1]):
        h = jnp.tanh(x @ wx + h @ wh + b)
    return x @ wx_list[-1] + h @ wh_list[-1] + b_list[-1]


def elman_ref(x, h0, wx_list, wh_list, b_list, w_out, b_out):
    prev = h0
    hidden = []
    for wx, wh, b in zip(wx_list, wh_list, b_list):
        prev = jnp.tanh(x @ wx + prev @ wh + b)
        hidden.append(prev)
    return hidden[-1] @ w_out + b_out, hidden


if __name__ == "__main__":
    key = jax.random.PRNGKey(0)
    layer_sizes = [32, 32]   # equal sizes (required by 'elman' / packed params)
    batch = 8

    key, kx = jax.random.split(key)
    x = jax.random.normal(kx, (batch, INPUT_DIM), jnp.float32)

    # ---- standard params ----
    std_w, std_b = [], []
    prev = INPUT_DIM
    for size in layer_sizes:
        key, k = jax.random.split(key)
        w, b = init_linear(k, prev, size)
        std_w.append(w); std_b.append(b)
        prev = size
    key, k = jax.random.split(key)
    w, b = init_linear(k, prev, 1)
    std_w.append(w); std_b.append(b)

    # ---- cascade params (Linear(prev+2, size) weight split into x / h parts) ----
    cas_wx, cas_wh, cas_b = [], [], []
    prev = INPUT_DIM
    for size in layer_sizes + [1]:
        key, k1 = jax.random.split(key)
        key, k2 = jax.random.split(key)
        fan_in = prev + INPUT_DIM
        bound = 1.0 / float(fan_in) ** 0.5
        wx = jax.random.uniform(k1, (INPUT_DIM, size), jnp.float32, -bound, bound)
        wh = jax.random.uniform(k2, (prev, size), jnp.float32, -bound, bound)
        key, kb = jax.random.split(key)
        bb = jax.random.uniform(kb, (1, size), jnp.float32, -bound, bound)
        cas_wx.append(wx); cas_wh.append(wh); cas_b.append(bb)
        prev = size

    # ---- elman params ----
    elm_wx, elm_wh, elm_b = [], [], []
    for size in layer_sizes:
        fan_in = INPUT_DIM + size
        bound = 1.0 / float(fan_in) ** 0.5
        key, k1 = jax.random.split(key)
        key, k2 = jax.random.split(key)
        key, kb = jax.random.split(key)
        elm_wx.append(jax.random.uniform(k1, (INPUT_DIM, size), jnp.float32, -bound, bound))
        elm_wh.append(jax.random.uniform(k2, (size, size), jnp.float32, -bound, bound))
        elm_b.append(jax.random.uniform(kb, (1, size), jnp.float32, -bound, bound))
    key, k = jax.random.split(key)
    elm_wo, elm_bo = init_linear(k, layer_sizes[-1], 1)
    h0 = jnp.zeros((batch, layer_sizes[0]), jnp.float32)  # initialize_hidden()[0]

    # ---- run kernels (small config) ----
    y_std = jax.block_until_ready(standard_forward(x, std_w, std_b))
    y_cas = jax.block_until_ready(cascade_forward(x, cas_wx, cas_wh, cas_b))
    y_elm, hidden_next = elman_forward(x, h0, elm_wx, elm_wh, elm_b, elm_wo, elm_bo)
    y_elm = jax.block_until_ready(y_elm)
    hidden_next = [jax.block_until_ready(h) for h in hidden_next]

    # ---- verify against pure-JAX references ----
    assert y_std.shape == (batch, 1) and y_cas.shape == (batch, 1) and y_elm.shape == (batch, 1)
    assert all(h.shape == (batch, s) for h, s in zip(hidden_next, layer_sizes))
    ref_std = standard_ref(x, std_w, std_b)
    ref_cas = cascade_ref(x, cas_wx, cas_wh, cas_b)
    ref_elm, ref_hid = elman_ref(x, h0, elm_wx, elm_wh, elm_b, elm_wo, elm_bo)
    # (1e-3: MXU f32 passes may round slightly differently than XLA's matmuls.)
    assert jnp.allclose(y_std, ref_std, atol=1e-3, rtol=1e-3)
    assert jnp.allclose(y_cas, ref_cas, atol=1e-3, rtol=1e-3)
    assert jnp.allclose(y_elm, ref_elm, atol=1e-3, rtol=1e-3)
    for h_k, h_r in zip(hidden_next, ref_hid):
        assert jnp.allclose(h_k, h_r, atol=1e-3, rtol=1e-3)

    # ---- wide / multi-grid-step config: MXU 1-unit head, 2 parallel grid steps ----
    big_sizes = [512, 512, 512]
    big_batch = 512
    key, kx2 = jax.random.split(key)
    xb = jax.random.normal(kx2, (big_batch, INPUT_DIM), jnp.float32)
    big_w, big_b = [], []
    prev = INPUT_DIM
    for size in big_sizes:
        key, k = jax.random.split(key)
        w, b = init_linear(k, prev, size)
        big_w.append(w); big_b.append(b)
        prev = size
    key, k = jax.random.split(key)
    w, b = init_linear(k, prev, 1)
    big_w.append(w); big_b.append(b)
    y_big = jax.block_until_ready(standard_forward(xb, big_w, big_b))
    ref_big = standard_ref(xb, big_w, big_b)
    assert y_big.shape == (big_batch, 1)
    assert jnp.allclose(y_big, ref_big, atol=5e-2, rtol=5e-2)

    print("KERNEL_OK")
</pallas_src>

<mosaic_0001>
module attributes {stable_mosaic.version = 11 : i64} {
  func.func @kernel(%arg0: i32, %arg1: memref<8x2xf32, #tpu.memory_space<vmem>>, %arg2: memref<2x32xf32, #tpu.memory_space<vmem>>, %arg3: memref<1x32xf32, #tpu.memory_space<vmem>>, %arg4: memref<1x32x32xf32, #tpu.memory_space<vmem>>, %arg5: memref<1x1x32xf32, #tpu.memory_space<vmem>>, %arg6: memref<1x32xf32, #tpu.memory_space<vmem>>, %arg7: memref<1x1xf32, #tpu.memory_space<vmem>>, %arg8: memref<8x1xf32, #tpu.memory_space<vmem>>) attributes {dimension_semantics = [#tpu.dimension_semantics<parallel>], iteration_bounds = array<i64: 1>, scalar_prefetch = 0 : i64, scratch_operands = 0 : i64, tpu.core_type = #tpu.core_type<tc>, window_params = [{transform_indices = @transform_0, window_bounds = array<i64: 8, 2>}, {pipeline_mode = #tpu.pipeline_mode<synchronous>, transform_indices = @transform_1, window_bounds = array<i64: 2, 32>}, {pipeline_mode = #tpu.pipeline_mode<synchronous>, transform_indices = @transform_2, window_bounds = array<i64: 1, 32>}, {pipeline_mode = #tpu.pipeline_mode<synchronous>, transform_indices = @transform_3, window_bounds = array<i64: 1, 32, 32>}, {pipeline_mode = #tpu.pipeline_mode<synchronous>, transform_indices = @transform_4, window_bounds = array<i64: 1, 1, 32>}, {pipeline_mode = #tpu.pipeline_mode<synchronous>, transform_indices = @transform_5, window_bounds = array<i64: 1, 32>}, {pipeline_mode = #tpu.pipeline_mode<synchronous>, transform_indices = @transform_6, window_bounds = array<i64: 1, 1>}, {transform_indices = @transform_7, window_bounds = array<i64: 8, 1>}]} {
    %c0 = arith.constant 0 : index
    %c0_0 = arith.constant 0 : index
    %0 = vector.load %arg1[%c0, %c0_0] : memref<8x2xf32, #tpu.memory_space<vmem>>, vector<8x2xf32>
    %1 = vector.extract_strided_slice %0 {offsets = [0, 0], sizes = [8, 1], strides = [1, 1]} : vector<8x2xf32> to vector<8x1xf32>
    %c0_1 = arith.constant 0 : index
    %c0_2 = arith.constant 0 : index
    %2 = vector.load %arg2[%c0_1, %c0_2] : memref<2x32xf32, #tpu.memory_space<vmem>>, vector<1x32xf32>
    %3 = vector.broadcast %1 : vector<8x1xf32> to vector<8x32xf32>
    %4 = vector.broadcast %2 : vector<1x32xf32> to vector<8x32xf32>
    %5 = arith.mulf %3, %4 : vector<8x32xf32>
    %6 = vector.extract_strided_slice %0 {offsets = [0, 1], sizes = [8, 1], strides = [1, 1]} : vector<8x2xf32> to vector<8x1xf32>
    %c1 = arith.constant 1 : index
    %c0_3 = arith.constant 0 : index
    %7 = vector.load %arg2[%c1, %c0_3] : memref<2x32xf32, #tpu.memory_space<vmem>>, vector<1x32xf32>
    %8 = vector.broadcast %6 : vector<8x1xf32> to vector<8x32xf32>
    %9 = vector.broadcast %7 : vector<1x32xf32> to vector<8x32xf32>
    %10 = arith.mulf %8, %9 : vector<8x32xf32>
    %11 = arith.addf %5, %10 : vector<8x32xf32>
    %c0_4 = arith.constant 0 : index
    %c0_5 = arith.constant 0 : index
    %12 = vector.load %arg3[%c0_4, %c0_5] : memref<1x32xf32, #tpu.memory_space<vmem>>, vector<1x32xf32>
    %13 = vector.broadcast %12 : vector<1x32xf32> to vector<8x32xf32>
    %14 = arith.addf %11, %13 : vector<8x32xf32>
    %15 = math.tanh %14 : vector<8x32xf32>
    %c0_6 = arith.constant 0 : index
    %c0_7 = arith.constant 0 : index
    %c0_8 = arith.constant 0 : index
    %16 = vector.load %arg4[%c0_6, %c0_7, %c0_8] : memref<1x32x32xf32, #tpu.memory_space<vmem>>, vector<1x32x32xf32>
    %17 = vector.shape_cast %16 : vector<1x32x32xf32> to vector<32x32xf32>
    %cst = arith.constant dense<0.000000e+00> : vector<8x32xf32>
    %18 = tpu.matmul %15, %17, %cst {dimension_numbers = #tpu.dot_dimension_numbers<[1], [0], [0], [1], [0, 0, 1, 1], [], []>} : vector<8x32xf32>, vector<32x32xf32>, vector<8x32xf32> -> vector<8x32xf32>
    %c0_9 = arith.constant 0 : index
    %c0_10 = arith.constant 0 : index
    %c0_11 = arith.constant 0 : index
    %19 = vector.load %arg5[%c0_9, %c0_10, %c0_11] : memref<1x1x32xf32, #tpu.memory_space<vmem>>, vector<1x1x32xf32>
    %20 = vector.shape_cast %19 : vector<1x1x32xf32> to vector<1x32xf32>
    %21 = vector.broadcast %20 : vector<1x32xf32> to vector<8x32xf32>
    %22 = arith.addf %18, %21 : vector<8x32xf32>
    %23 = math.tanh %22 : vector<8x32xf32>
    %c0_12 = arith.constant 0 : index
    %c0_13 = arith.constant 0 : index
    %24 = vector.load %arg6[%c0_12, %c0_13] : memref<1x32xf32, #tpu.memory_space<vmem>>, vector<1x32xf32>
    %25 = vector.broadcast %24 : vector<1x32xf32> to vector<8x32xf32>
    %26 = arith.mulf %23, %25 : vector<8x32xf32>
    %cst_14 = arith.constant dense<0.000000e+00> : vector<8xf32>
    %27 = vector.multi_reduction <add>, %26, %cst_14 [1] : vector<8x32xf32> to vector<8xf32>
    %28 = vector.shape_cast %27 : vector<8xf32> to vector<8x1xf32>
    %c0_15 = arith.constant 0 : index
    %c0_16 = arith.constant 0 : index
    %29 = vector.load %arg7[%c0_15, %c0_16] : memref<1x1xf32, #tpu.memory_space<vmem>>, vector<1x1xf32>
    %30 = vector.broadcast %29 : vector<1x1xf32> to vector<8x1xf32>
    %31 = arith.addf %28, %30 : vector<8x1xf32>
    %c0_17 = arith.constant 0 : index
    %c0_18 = arith.constant 0 : index
    %32 = vector.load %arg8[%c0_17, %c0_18] : memref<8x1xf32, #tpu.memory_space<vmem>>, vector<8x1xf32>
    tpu.vector_store %arg8[%c0_17, %c0_18], %31 {strides = array<i32>} : memref<8x1xf32, #tpu.memory_space<vmem>>, vector<8x1xf32>,
    return
  }
  func.func @transform_0(%arg0: i32) -> (i32, i32) {
    %c0_i32 = arith.constant 0 : i32
    %c0_i32_0 = arith.constant 0 : i32
    return %arg0, %c0_i32 : i32, i32
  }
  func.func @transform_1(%arg0: i32) -> (i32, i32) {
    %c0_i32 = arith.constant 0 : i32
    %c0_i32_0 = arith.constant 0 : i32
    %c0_i32_1 = arith.constant 0 : i32
    return %c0_i32, %c0_i32_0 : i32, i32
  }
  func.func @transform_2(%arg0: i32) -> (i32, i32) {
    %c0_i32 = arith.constant 0 : i32
    %c0_i32_0 = arith.constant 0 : i32
    %c0_i32_1 = arith.constant 0 : i32
    return %c0_i32, %c0_i32_0 : i32, i32
  }
  func.func @transform_3(%arg0: i32) -> (i32, i32, i32) {
    %c0_i32 = arith.constant 0 : i32
    %c0_i32_0 = arith.constant 0 : i32
    %c0_i32_1 = arith.constant 0 : i32
    %c0_i32_2 = arith.constant 0 : i32
    return %c0_i32, %c0_i32_0, %c0_i32_1 : i32, i32, i32
  }
  func.func @transform_4(%arg0: i32) -> (i32, i32, i32) {
    %c0_i32 = arith.constant 0 : i32
    %c0_i32_0 = arith.constant 0 : i32
    %c0_i32_1 = arith.constant 0 : i32
    %c0_i32_2 = arith.constant 0 : i32
    return %c0_i32, %c0_i32_0, %c0_i32_1 : i32, i32, i32
  }
  func.func @transform_5(%arg0: i32) -> (i32, i32) {
    %c0_i32 = arith.constant 0 : i32
    %c0_i32_0 = arith.constant 0 : i32
    %c0_i32_1 = arith.constant 0 : i32
    return %c0_i32, %c0_i32_0 : i32, i32
  }
  func.func @transform_6(%arg0: i32) -> (i32, i32) {
    %c0_i32 = arith.constant 0 : i32
    %c0_i32_0 = arith.constant 0 : i32
    %c0_i32_1 = arith.constant 0 : i32
    return %c0_i32, %c0_i32_0 : i32, i32
  }
  func.func @transform_7(%arg0: i32) -> (i32, i32) {
    %c0_i32 = arith.constant 0 : i32
    %c0_i32_0 = arith.constant 0 : i32
    return %arg0, %c0_i32 : i32, i32
  }
}

module attributes {stable_mosaic.version = 11 : i64} {
  func.func @kernel(%arg0: i32, %arg1: memref<8x2xf32, #tpu.memory_space<vmem>>, %arg2: memref<2x32xf32, #tpu.memory_space<vmem>>, %arg3: memref<1x32xf32, #tpu.memory_space<vmem>>, %arg4: memref<1x32x32xf32, #tpu.memory_space<vmem>>, %arg5: memref<1x1x32xf32, #tpu.memory_space<vmem>>, %arg6: memref<1x32xf32, #tpu.memory_space<vmem>>, %arg7: memref<1x1xf32, #tpu.memory_space<vmem>>, %arg8: memref<8x1xf32, #tpu.memory_space<vmem>>) attributes {dimension_semantics = [#tpu.dimension_semantics<parallel>], iteration_bounds = array<i64: 1>, scalar_prefetch = 0 : i64, scratch_operands = 0 : i64, tpu.core_type = #tpu.core_type<tc>, window_params = [{transform_indices = @transform_0, window_bounds = array<i64: 8, 2>}, {pipeline_mode = #tpu.pipeline_mode<synchronous>, transform_indices = @transform_1, window_bounds = array<i64: 2, 32>}, {pipeline_mode = #tpu.pipeline_mode<synchronous>, transform_indices = @transform_2, window_bounds = array<i64: 1, 32>}, {pipeline_mode = #tpu.pipeline_mode<synchronous>, transform_indices = @transform_3, window_bounds = array<i64: 1, 32, 32>}, {pipeline_mode = #tpu.pipeline_mode<synchronous>, transform_indices = @transform_4, window_bounds = array<i64: 1, 1, 32>}, {pipeline_mode = #tpu.pipeline_mode<synchronous>, transform_indices = @transform_5, window_bounds = array<i64: 1, 32>}, {pipeline_mode = #tpu.pipeline_mode<synchronous>, transform_indices = @transform_6, window_bounds = array<i64: 1, 1>}, {transform_indices = @transform_7, window_bounds = array<i64: 8, 1>}]} {
    %c0 = arith.constant 0 : index
    %c0_0 = arith.constant 0 : index
    %0 = vector.load %arg1[%c0, %c0_0] : memref<8x2xf32, #tpu.memory_space<vmem>>, vector<8x2xf32>
    %1 = vector.extract_strided_slice %0 {offsets = [0, 0], sizes = [8, 1], strides = [1, 1]} : vector<8x2xf32> to vector<8x1xf32>
    %c0_1 = arith.constant 0 : index
    %c0_2 = arith.constant 0 : index
    %2 = vector.load %arg2[%c0_1, %c0_2] : memref<2x32xf32, #tpu.memory_space<vmem>>, vector<1x32xf32>
    %3 = vector.broadcast %1 : vector<8x1xf32> to vector<8x32xf32>
    %4 = vector.broadcast %2 : vector<1x32xf32> to vector<8x32xf32>
    %5 = arith.mulf %3, %4 : vector<8x32xf32>
    %6 = vector.extract_strided_slice %0 {offsets = [0, 1], sizes = [8, 1], strides = [1, 1]} : vector<8x2xf32> to vector<8x1xf32>
    %c1 = arith.constant 1 : index
    %c0_3 = arith.constant 0 : index
    %7 = vector.load %arg2[%c1, %c0_3] : memref<2x32xf32, #tpu.memory_space<vmem>>, vector<1x32xf32>
    %8 = vector.broadcast %6 : vector<8x1xf32> to vector<8x32xf32>
    %9 = vector.broadcast %7 : vector<1x32xf32> to vector<8x32xf32>
    %10 = arith.mulf %8, %9 : vector<8x32xf32>
    %11 = arith.addf %5, %10 : vector<8x32xf32>
    %c0_4 = arith.constant 0 : index
    %c0_5 = arith.constant 0 : index
    %12 = vector.load %arg3[%c0_4, %c0_5] : memref<1x32xf32, #tpu.memory_space<vmem>>, vector<1x32xf32>
    %13 = vector.broadcast %12 : vector<1x32xf32> to vector<8x32xf32>
    %14 = arith.addf %11, %13 : vector<8x32xf32>
    %15 = math.tanh %14 : vector<8x32xf32>
    %c0_6 = arith.constant 0 : index
    %c0_7 = arith.constant 0 : index
    %c0_8 = arith.constant 0 : index
    %16 = vector.load %arg4[%c0_6, %c0_7, %c0_8] : memref<1x32x32xf32, #tpu.memory_space<vmem>>, vector<1x32x32xf32>
    %17 = vector.shape_cast %16 : vector<1x32x32xf32> to vector<32x32xf32>
    %cst = arith.constant dense<0.000000e+00> : vector<8x32xf32>
    %18 = tpu.matmul %15, %17, %cst {dimension_numbers = #tpu.dot_dimension_numbers<[1], [0], [0], [1], [0, 0, 1, 1], [], []>} : vector<8x32xf32>, vector<32x32xf32>, vector<8x32xf32> -> vector<8x32xf32>
    %c0_9 = arith.constant 0 : index
    %c0_10 = arith.constant 0 : index
    %c0_11 = arith.constant 0 : index
    %19 = vector.load %arg5[%c0_9, %c0_10, %c0_11] : memref<1x1x32xf32, #tpu.memory_space<vmem>>, vector<1x1x32xf32>
    %20 = vector.shape_cast %19 : vector<1x1x32xf32> to vector<1x32xf32>
    %21 = vector.broadcast %20 : vector<1x32xf32> to vector<8x32xf32>
    %22 = arith.addf %18, %21 : vector<8x32xf32>
    %23 = math.tanh %22 : vector<8x32xf32>
    %c0_12 = arith.constant 0 : index
    %c0_13 = arith.constant 0 : index
    %24 = vector.load %arg6[%c0_12, %c0_13] : memref<1x32xf32, #tpu.memory_space<vmem>>, vector<1x32xf32>
    %25 = vector.broadcast %24 : vector<1x32xf32> to vector<8x32xf32>
    %26 = arith.mulf %23, %25 : vector<8x32xf32>
    %cst_14 = arith.constant dense<0.000000e+00> : vector<8xf32>
    %27 = vector.multi_reduction <add>, %26, %cst_14 [1] : vector<8x32xf32> to vector<8xf32>
    %28 = vector.shape_cast %27 : vector<8xf32> to vector<8x1xf32>
    %c0_15 = arith.constant 0 : index
    %c0_16 = arith.constant 0 : index
    %29 = vector.load %arg7[%c0_15, %c0_16] : memref<1x1xf32, #tpu.memory_space<vmem>>, vector<1x1xf32>
    %30 = vector.broadcast %29 : vector<1x1xf32> to vector<8x1xf32>
    %31 = arith.addf %28, %30 : vector<8x1xf32>
    %c0_17 = arith.constant 0 : index
    %c0_18 = arith.constant 0 : index
    %32 = vector.load %arg8[%c0_17, %c0_18] : memref<8x1xf32, #tpu.memory_space<vmem>>, vector<8x1xf32>
    tpu.vector_store %arg8[%c0_17, %c0_18], %31 {strides = array<i32>} : memref<8x1xf32, #tpu.memory_space<vmem>>, vector<8x1xf32>,
    return
  }
  func.func @transform_0(%arg0: i32) -> (i32, i32) {
    %c0_i32 = arith.constant 0 : i32
    %c0_i32_0 = arith.constant 0 : i32
    return %arg0, %c0_i32 : i32, i32
  }
  func.func @transform_1(%arg0: i32) -> (i32, i32) {
    %c0_i32 = arith.constant 0 : i32
    %c0_i32_0 = arith.constant 0 : i32
    %c0_i32_1 = arith.constant 0 : i32
    return %c0_i32, %c0_i32_0 : i32, i32
  }
  func.func @transform_2(%arg0: i32) -> (i32, i32) {
    %c0_i32 = arith.constant 0 : i32
    %c0_i32_0 = arith.constant 0 : i32
    %c0_i32_1 = arith.constant 0 : i32
    return %c0_i32, %c0_i32_0 : i32, i32
  }
  func.func @transform_3(%arg0: i32) -> (i32, i32, i32) {
    %c0_i32 = arith.constant 0 : i32
    %c0_i32_0 = arith.constant 0 : i32
    %c0_i32_1 = arith.constant 0 : i32
    %c0_i32_2 = arith.constant 0 : i32
    return %c0_i32, %c0_i32_0, %c0_i32_1 : i32, i32, i32
  }
  func.func @transform_4(%arg0: i32) -> (i32, i32, i32) {
    %c0_i32 = arith.constant 0 : i32
    %c0_i32_0 = arith.constant 0 : i32
    %c0_i32_1 = arith.constant 0 : i32
    %c0_i32_2 = arith.constant 0 : i32
    return %c0_i32, %c0_i32_0, %c0_i32_1 : i32, i32, i32
  }
  func.func @transform_5(%arg0: i32) -> (i32, i32) {
    %c0_i32 = arith.constant 0 : i32
    %c0_i32_0 = arith.constant 0 : i32
    %c0_i32_1 = arith.constant 0 : i32
    return %c0_i32, %c0_i32_0 : i32, i32
  }
  func.func @transform_6(%arg0: i32) -> (i32, i32) {
    %c0_i32 = arith.constant 0 : i32
    %c0_i32_0 = arith.constant 0 : i32
    %c0_i32_1 = arith.constant 0 : i32
    return %c0_i32, %c0_i32_0 : i32, i32
  }
  func.func @transform_7(%arg0: i32) -> (i32, i32) {
    %c0_i32 = arith.constant 0 : i32
    %c0_i32_0 = arith.constant 0 : i32
    return %arg0, %c0_i32 : i32, i32
  }
}

</mosaic_0001>

<bundles_post_ra>
// kernel: tpu_custom_call.1
= control target key start
LH: loop header
LB: loop body
LE: loop exit
PB: predicated region body
PF: predicated region fallthrough
CT: control target
= control target key end

     0   :  { %s337_s0 = inlined_call_operand.vmem [shape: f32[8,2], index: 0, kind: input, shape index: {}]   ;;  %s338_s1 = inlined_call_operand.vmem [shape: f32[2,32], index: 1, kind: input, shape index: {}]   ;;  %s339_s2 = inlined_call_operand.vmem [shape: f32[1,32], index: 2, kind: input, shape index: {}]   ;;  %s340_s3 = inlined_call_operand.hbm [shape: f32[1,32,32], index: 3, kind: input, shape index: {}]   ;;  %s341_s4 = inlined_call_operand.vmem [shape: f32[1,1,32], index: 4, kind: input, shape index: {}]   ;;  %s342_s5 = inlined_call_operand.vmem [shape: f32[1,32], index: 5, kind: input, shape index: {}]   ;;  %s343_s6 = inlined_call_operand.<no memory space> [shape: f32[1,1], index: 6, kind: input, shape index: {}]   ;;  %s344_s7 = inlined_call_operand.vmem [shape: f32[8,1], index: 7, kind: output, shape index: {}]  }
   0x1   :  { %v12_v0 = vstv %s343_s6 }
   0x2   :  { %13 = vst [vmem:[#allocation2] sm:$0x1] %v12_v0 }
   0x3   :  { %14 = vsyncpa [#allocation4], 0  ;;  %s253_s26 = smov [#allocation3]   ;;  %s229_s30 = scalar_lea.hbm %s340_s3, 512 }
   0x4   :  { %s26_s27 = sshll.u32 %s253_s26, 4  ;;  %p230_p0 = scmp.ne.s32.totalorder %s340_s3, %s229_s30  ;;  %s27_s27 = int_to_ptr.vmem [resolvable:$true] %s26_s27 }
   0x5   :  { %p233_p1 = scmp.lt.u32.totalorder %s229_s30, %s340_s3 }
   0x7   :  { %p235_p2 = pnand %p233_p1, %p230_p0 }
   0x9   :  { %238 = shalt.err (!%p235_p2)
}
   0xa   :  { %s239_s6 = scalar_lea.vmem %s27_s27, 512  ;;  %p244_p4 = scmp.lt.s32.totalorder %s27_s27, %s27_s27 }
   0xb   :  { %p240_p3 = scmp.ne.s32.totalorder %s27_s27, %s239_s6  ;;  %p245_p5 = scmp.lt.s32.totalorder %s239_s6, %s239_s6 }
   0xd   :  { %p246_p6 = por %p245_p5, %p244_p4 }
   0xf   :  { %p247_p7 = pnand %p246_p6, %p240_p3 }
  0x11   :  { %250 = shalt.err (!%p247_p7)
}
  0x12   :  { %s254_s12 = smov 128   ;;  %s255_s13 = smov 8  }
  0x13   :  { %32 = dma.hbm_to_vmem [thread:$0]  %s340_s3, 512, %s27_s27, [#allocation4], %s254_s12, %s254_s12, %s255_s13  }
  0x14   :  { %251 = dma.done.wait [#allocation4], 512  }
  0x15   :  { %252 = vsyncadd [#allocation4], 4294966784  ;;  %v256_v1 = vmov 0   ;;  %v42_v2 = vld [vmem:[%s337_s0] sm:$0xff]  ;;  %v257_v3 = vmov 1   ;;  %v75_v5 = vld [vmem:[#allocation3 + $0x8] sm:$0xff] }
  0x16   :  { %223 = vset.pattern.permute.xlu0 %v256_v1  ;;  %v74_v4 = vld [vmem:[#allocation3] sm:$0xff]  ;;  %v76_v6 = vld [vmem:[#allocation3 + $0x10] sm:$0xff]  ;;  %v258_v7 = vmov 0.0|0.0   ;;  %v77_v9 = vld [vmem:[#allocation3 + $0x18] sm:$0xff]  ;;  %vm259_vm0 = vmmov 0   ;;  %v260_v10 = vmov 0.0  }
  0x17   :  { %46 = vperm.xlu0 %223, %v42_v2   ;;  %209 = vmatprep.subr.bf16.mxu0 %v258_v7  ;;  %v210_v8 = vpack.c.bf16 %v75_v5, %v74_v4  ;;  %v213_v11 = vpack.c.bf16 %v77_v9, %v76_v6  ;;  %v186_v13 = vld [vmem:[%s338_s1] ss:$0 sm:$0xff]  ;;  %v187_v14 = vld [vmem:[%s338_s1 + $0x1] ss:$0 sm:$0xff]  ;;  %vm85_vm1 = vcmask 261120   ;;  %vm179_vm2 = vcmask 7168  }
  0x18   :  { %206 = vmatprep.mubr.msk.f32.mxu0 %vm259_vm0, %v260_v10  ;;  %v188_v18 = vld [vmem:[%s339_s2] ss:$0 sm:$0xff] }
  0x19   :  { %211 = vmatpush3.bf16.msra.mxu0 %v210_v8  ;;  %v189_v22 = vld [vmem:[%s341_s4] ss:$0 sm:$0xff] }
  0x1a   :  { %212 = vmatprep.subr.bf16.mxu0 %v258_v7  ;;  %v191_v26 = vld [vmem:[%s342_s5] ss:$0 sm:$0xff] }
  0x1b   :  { %224 = vset.pattern.permute.xlu0 %v257_v3  ;;  %v192_v30 = vld [vmem:[#allocation2] ss:$0 sm:$0xff] }
  0x1c   :  { %56 = vperm.xlu0 %224, %v42_v2  }
  0x1d   :  { %214 = vmatpush3.bf16.msra.mxu0 %v213_v11 }
  0x96   :  { %v47_v12 = vpop.permute.xlu0 %46 }
  0x97   :  { %v53_v16 = vmul.f32 %v186_v13, %v47_v12 }
  0x9b   :  { %v57_v15 = vpop.permute.xlu0 %56 }
  0x9c   :  { %v63_v17 = vmul.f32 %v187_v14, %v57_v15 }
  0x9e   :  { %v64_v19 = vadd.f32 %v63_v17, %v53_v16 }
  0xa0   :  { %v72_v20 = vadd.f32 %v188_v18, %v64_v19 }
  0xa2   :  { %225 = vtanh.f32 %v72_v20 }
  0xac   :  { %v226_v21 = vpop.eup %225 }
  0xad   :  { %207 = vmatmul.mubr.msk.f32.vlgmr.msra.gmra.mrb[0].mxu0 %vm85_vm1, %v226_v21 }
 0x180   :  { %v155_v23 = vpop.f32.mrb[0].mxu0 }
 0x181   :  { %v156_v24 = vadd.f32 %v189_v22, %v155_v23  ;;  %v208_v25 = vpop.f32.mrb[1].mxu0 }
 0x183   :  { %227 = vtanh.f32 %v156_v24 }
 0x18d   :  { %v228_v27 = vpop.eup %227 }
 0x18e   :  { %v167_v28 = vmul.f32 %v228_v27, %v191_v26 }
 0x190   :  { %v168_v29 = vsel %vm85_vm1, %v167_v28, 0.0 }
 0x191   :  { %169 = vadd.xlane.f32.xlu1 %v168_v29 }
 0x21e   :  { %v170_v31 = vpop.xlane.xlu1 %169 }
 0x21f   :  { %v178_v32 = vadd.f32 %v192_v30, %v170_v31 }
 0x221   :  { %180 = vst.msk [vmem:[%s344_s7] sm:$0xff] %vm179_vm2, %v178_v32 }
 0x222   :  { %185 = vsyncpa [#allocation4], 1 }

// kernel: tpu_custom_call.1
= control target key start
LH: loop header
LB: loop body
LE: loop exit
PB: predicated region body
PF: predicated region fallthrough
CT: control target
= control target key end

     0   :  { %s337_s0 = inlined_call_operand.vmem [shape: f32[8,2], index: 0, kind: input, shape index: {}]   ;;  %s338_s1 = inlined_call_operand.vmem [shape: f32[2,32], index: 1, kind: input, shape index: {}]   ;;  %s339_s2 = inlined_call_operand.vmem [shape: f32[1,32], index: 2, kind: input, shape index: {}]   ;;  %s340_s3 = inlined_call_operand.hbm [shape: f32[1,32,32], index: 3, kind: input, shape index: {}]   ;;  %s341_s4 = inlined_call_operand.vmem [shape: f32[1,1,32], index: 4, kind: input, shape index: {}]   ;;  %s342_s5 = inlined_call_operand.vmem [shape: f32[1,32], index: 5, kind: input, shape index: {}]   ;;  %s343_s6 = inlined_call_operand.<no memory space> [shape: f32[1,1], index: 6, kind: input, shape index: {}]   ;;  %s344_s7 = inlined_call_operand.vmem [shape: f32[8,1], index: 7, kind: output, shape index: {}]  }
   0x1   :  { %v12_v0 = vstv %s343_s6 }
   0x2   :  { %13 = vst [vmem:[#allocation2] sm:$0x1] %v12_v0 }
   0x3   :  { %14 = vsyncpa [#allocation4], 0  ;;  %s253_s26 = smov [#allocation3]   ;;  %s229_s30 = scalar_lea.hbm %s340_s3, 512 }
   0x4   :  { %s26_s27 = sshll.u32 %s253_s26, 4  ;;  %p230_p0 = scmp.ne.s32.totalorder %s340_s3, %s229_s30  ;;  %s27_s27 = int_to_ptr.vmem [resolvable:$true] %s26_s27 }
   0x5   :  { %p233_p1 = scmp.lt.u32.totalorder %s229_s30, %s340_s3 }
   0x7   :  { %p235_p2 = pnand %p233_p1, %p230_p0 }
   0x9   :  { %238 = shalt.err (!%p235_p2)
}
   0xa   :  { %s239_s6 = scalar_lea.vmem %s27_s27, 512  ;;  %p244_p4 = scmp.lt.s32.totalorder %s27_s27, %s27_s27 }
   0xb   :  { %p240_p3 = scmp.ne.s32.totalorder %s27_s27, %s239_s6  ;;  %p245_p5 = scmp.lt.s32.totalorder %s239_s6, %s239_s6 }
   0xd   :  { %p246_p6 = por %p245_p5, %p244_p4 }
   0xf   :  { %p247_p7 = pnand %p246_p6, %p240_p3 }
  0x11   :  { %250 = shalt.err (!%p247_p7)
}
  0x12   :  { %s254_s12 = smov 128   ;;  %s255_s13 = smov 8  }
  0x13   :  { %32 = dma.hbm_to_vmem [thread:$0]  %s340_s3, 512, %s27_s27, [#allocation4], %s254_s12, %s254_s12, %s255_s13  }
  0x14   :  { %251 = dma.done.wait [#allocation4], 512  }
  0x15   :  { %252 = vsyncadd [#allocation4], 4294966784  ;;  %v256_v1 = vmov 0   ;;  %v42_v2 = vld [vmem:[%s337_s0] sm:$0xff]  ;;  %v257_v3 = vmov 1   ;;  %v75_v5 = vld [vmem:[#allocation3 + $0x8] sm:$0xff] }
  0x16   :  { %223 = vset.pattern.permute.xlu0 %v256_v1  ;;  %v74_v4 = vld [vmem:[#allocation3] sm:$0xff]  ;;  %v76_v6 = vld [vmem:[#allocation3 + $0x10] sm:$0xff]  ;;  %v258_v7 = vmov 0.0|0.0   ;;  %v77_v9 = vld [vmem:[#allocation3 + $0x18] sm:$0xff]  ;;  %vm259_vm0 = vmmov 0   ;;  %v260_v10 = vmov 0.0  }
  0x17   :  { %46 = vperm.xlu0 %223, %v42_v2   ;;  %209 = vmatprep.subr.bf16.mxu0 %v258_v7  ;;  %v210_v8 = vpack.c.bf16 %v75_v5, %v74_v4  ;;  %v213_v11 = vpack.c.bf16 %v77_v9, %v76_v6  ;;  %v186_v13 = vld [vmem:[%s338_s1] ss:$0 sm:$0xff]  ;;  %v187_v14 = vld [vmem:[%s338_s1 + $0x1] ss:$0 sm:$0xff]  ;;  %vm85_vm1 = vcmask 261120   ;;  %vm179_vm2 = vcmask 7168  }
  0x18   :  { %206 = vmatprep.mubr.msk.f32.mxu0 %vm259_vm0, %v260_v10  ;;  %v188_v18 = vld [vmem:[%s339_s2] ss:$0 sm:$0xff] }
  0x19   :  { %211 = vmatpush3.bf16.msra.mxu0 %v210_v8  ;;  %v189_v22 = vld [vmem:[%s341_s4] ss:$0 sm:$0xff] }
  0x1a   :  { %212 = vmatprep.subr.bf16.mxu0 %v258_v7  ;;  %v191_v26 = vld [vmem:[%s342_s5] ss:$0 sm:$0xff] }
  0x1b   :  { %224 = vset.pattern.permute.xlu0 %v257_v3  ;;  %v192_v30 = vld [vmem:[#allocation2] ss:$0 sm:$0xff] }
  0x1c   :  { %56 = vperm.xlu0 %224, %v42_v2  }
  0x1d   :  { %214 = vmatpush3.bf16.msra.mxu0 %v213_v11 }
  0x96   :  { %v47_v12 = vpop.permute.xlu0 %46 }
  0x97   :  { %v53_v16 = vmul.f32 %v186_v13, %v47_v12 }
  0x9b   :  { %v57_v15 = vpop.permute.xlu0 %56 }
  0x9c   :  { %v63_v17 = vmul.f32 %v187_v14, %v57_v15 }
  0x9e   :  { %v64_v19 = vadd.f32 %v63_v17, %v53_v16 }
  0xa0   :  { %v72_v20 = vadd.f32 %v188_v18, %v64_v19 }
  0xa2   :  { %225 = vtanh.f32 %v72_v20 }
  0xac   :  { %v226_v21 = vpop.eup %225 }
  0xad   :  { %207 = vmatmul.mubr.msk.f32.vlgmr.msra.gmra.mrb[0].mxu0 %vm85_vm1, %v226_v21 }
 0x180   :  { %v155_v23 = vpop.f32.mrb[0].mxu0 }
 0x181   :  { %v156_v24 = vadd.f32 %v189_v22, %v155_v23  ;;  %v208_v25 = vpop.f32.mrb[1].mxu0 }
 0x183   :  { %227 = vtanh.f32 %v156_v24 }
 0x18d   :  { %v228_v27 = vpop.eup %227 }
 0x18e   :  { %v167_v28 = vmul.f32 %v228_v27, %v191_v26 }
 0x190   :  { %v168_v29 = vsel %vm85_vm1, %v167_v28, 0.0 }
 0x191   :  { %169 = vadd.xlane.f32.xlu1 %v168_v29 }
 0x21e   :  { %v170_v31 = vpop.xlane.xlu1 %169 }
 0x21f   :  { %v178_v32 = vadd.f32 %v192_v30, %v170_v31 }
 0x221   :  { %180 = vst.msk [vmem:[%s344_s7] sm:$0xff] %vm179_vm2, %v178_v32 }
 0x222   :  { %185 = vsyncpa [#allocation4], 1 }

</bundles_post_ra>
